<compile_context>
chip_gen: v5e
topology: v5e:2x2
jax: 0.10.0
libtpu: 0.0.40
codegen_flags: <defaults>
</compile_context>

<pallas_src>
import jax
import jax.numpy as jnp
from jax.experimental import pallas as pl
from jax.experimental.pallas import tpu as pltpu

INPUT_DIM = 784
LATENT_DIM = 20
H1 = 128
H2 = 64


def _round_up(n, m):
    return ((n + m - 1) // m) * m


def vae_kernel(
    x_ref,
    w1_ref, b1_ref,
    w2_ref, b2_ref,
    wmulv_ref, bmulv_ref,     # fused fc3_mu || fc3_logvar -> (64, 40)
    w4_ref, b4_ref,
    w5_ref, b5_ref,
    w6_ref, b6_ref,
    eps_ref,
    recon_ref, mulv_ref,
):
    def linear(a, w_ref, b_ref):
        # bf16 operands into the MXU, f32 accumulation, f32 bias add.
        return (
            jnp.dot(a.astype(w_ref.dtype), w_ref[...],
                    preferred_element_type=jnp.float32)
            + b_ref[...]
        )

    x = x_ref[...]                                           # (TB, 784) bf16

    # ---- encode ----
    h1 = jnp.maximum(linear(x, w1_ref, b1_ref), 0.0)         # relu(fc1)
    h2 = jnp.maximum(linear(h1, w2_ref, b2_ref), 0.0)        # relu(fc2)
    mulv = linear(h2, wmulv_ref, bmulv_ref)                  # (TB, 2*LATENT_DIM) f32
    mu = mulv[:, :LATENT_DIM]
    logvar = mulv[:, LATENT_DIM:]

    # ---- reparameterize (eps supplied explicitly, torch.randn_like equivalent) ----
    std = jnp.exp(0.5 * logvar)
    z = mu + eps_ref[...] * std

    # ---- decode (f32 elementwise math throughout; v5e has no bf16 VPU/EUP) ----
    h3 = jnp.maximum(linear(z, w4_ref, b4_ref), 0.0)         # relu(fc4)
    h4 = jnp.maximum(linear(h3, w5_ref, b5_ref), 0.0)        # relu(fc5)
    recon = jax.nn.sigmoid(linear(h4, w6_ref, b6_ref))       # sigmoid(fc6)

    recon_ref[...] = recon.astype(recon_ref.dtype)
    mulv_ref[...] = mulv


def prepare_params(params, weight_dtype=jnp.bfloat16):
    """One-time weight prep: bf16 cast for MXU operands + fused mu/logvar projection.

    Input params use (in, out) weights and (1, out) biases (PyTorch-equivalent math).
    Biases stay f32 (added post-accumulation).
    """
    wd = weight_dtype
    return {
        "w1": params["w1"].astype(wd), "b1": params["b1"],
        "w2": params["w2"].astype(wd), "b2": params["b2"],
        "wmulv": jnp.concatenate([params["wmu"], params["wlv"]], axis=1).astype(wd),
        "bmulv": jnp.concatenate([params["bmu"], params["blv"]], axis=1),
        "w4": params["w4"].astype(wd), "b4": params["b4"],
        "w5": params["w5"].astype(wd), "b5": params["b5"],
        "w6": params["w6"].astype(wd), "b6": params["b6"],
    }


def _choose_tb(B, block_b):
    """Pick the batch tile: multiple of 8, <= block_b, preferring tiles that divide
    the (8-aligned) batch (no padding copy) and give >= 2 grid steps (v7x megacore)."""
    B8 = _round_up(B, 8)
    limit = max(8, (min(block_b, B8) // 8) * 8)
    if B8 < 16:
        return limit
    for tb in range(limit, 63, -8):          # largest divisor >= 64 rows with >= 2 steps
        if B8 % tb == 0 and B8 // tb >= 2:
            return tb
    # Fallback: split the batch in two (tail tile gets padded if needed).
    return min(limit, _round_up(pl.cdiv(B8, 2), 8))


def vae_forward(x, prepped, eps, *, block_b=512, recon_dtype=jnp.float32,
                x_dtype=jnp.bfloat16):
    """Full VAE forward pass in one batch-tiled Pallas call.

    x:       (B, INPUT_DIM) f32
    prepped: output of prepare_params()
    eps:     (B, LATENT_DIM) f32 standard-normal noise (torch.randn_like equivalent)
    returns (recon, mu, logvar) with PyTorch shapes (recon dtype = recon_dtype).
    """
    B = x.shape[0]
    assert x.shape[1] == INPUT_DIM
    TB = _choose_tb(B, block_b)
    Bp = _round_up(B, TB)

    # bf16 MXU operand for the first layer; under jit this cast fuses into x's producer.
    x_in = x.astype(x_dtype)
    eps_in = eps
    if Bp != B:
        # Ragged batch only: pad the batch dim (feature dim stays at its native 784).
        x_in = jnp.zeros((Bp, INPUT_DIM), x_dtype).at[:B].set(x_in)
        eps_in = jnp.zeros((Bp, LATENT_DIM), eps.dtype).at[:B].set(eps)

    operands = (
        x_in,
        prepped["w1"], prepped["b1"],
        prepped["w2"], prepped["b2"],
        prepped["wmulv"], prepped["bmulv"],
        prepped["w4"], prepped["b4"],
        prepped["w5"], prepped["b5"],
        prepped["w6"], prepped["b6"],
        eps_in,
    )

    def batch_spec(cols):
        return pl.BlockSpec((TB, cols), lambda i: (i, 0))

    def resident_spec(arr):
        # Full-array block with a constant index_map -> stays resident in VMEM
        # across grid steps (~0.5 MB of bf16 weights total).
        return pl.BlockSpec(arr.shape, lambda i: (0, 0))

    in_specs = (
        [batch_spec(INPUT_DIM)]
        + [resident_spec(op) for op in operands[1:-1]]
        + [batch_spec(LATENT_DIM)]
    )

    out_shape = (
        jax.ShapeDtypeStruct((Bp, INPUT_DIM), recon_dtype),
        jax.ShapeDtypeStruct((Bp, 2 * LATENT_DIM), jnp.float32),
    )
    out_specs = (
        batch_spec(INPUT_DIM),
        batch_spec(2 * LATENT_DIM),
    )

    recon, mulv = pl.pallas_call(
        vae_kernel,
        out_shape=out_shape,
        grid=(Bp // TB,),
        in_specs=in_specs,
        out_specs=out_specs,
        compiler_params=pltpu.CompilerParams(
            dimension_semantics=("parallel",),   # independent batch tiles (megacore on v7x)
        ),
    )(*operands)

    if Bp != B:
        recon = recon[:B]
        mulv = mulv[:B]
    mu = mulv[:, :LATENT_DIM]
    logvar = mulv[:, LATENT_DIM:]
    return recon, mu, logvar


def init_params(key):
    """Deterministic synthetic parameter init (shapes match the nn.Module)."""
    dims = [
        ("w1", "b1", INPUT_DIM, H1),
        ("w2", "b2", H1, H2),
        ("wmu", "bmu", H2, LATENT_DIM),
        ("wlv", "blv", H2, LATENT_DIM),
        ("w4", "b4", LATENT_DIM, H2),
        ("w5", "b5", H2, H1),
        ("w6", "b6", H1, INPUT_DIM),
    ]
    params = {}
    keys = jax.random.split(key, len(dims))
    for k, (wn, bn, fan_in, fan_out) in zip(keys, dims):
        kw, kb = jax.random.split(k)
        bound = 1.0 / jnp.sqrt(fan_in)  # mimic PyTorch Linear default scale
        params[wn] = jax.random.uniform(kw, (fan_in, fan_out), jnp.float32, -bound, bound)
        params[bn] = jax.random.uniform(kb, (1, fan_out), jnp.float32, -bound, bound)
    return params


def vae_reference(x, params, eps):
    """Pure-JAX f32 reference for sanity checking."""
    def lin(a, w, b):
        return a @ w + b

    h1 = jax.nn.relu(lin(x, params["w1"], params["b1"]))
    h2 = jax.nn.relu(lin(h1, params["w2"], params["b2"]))
    mu = lin(h2, params["wmu"], params["bmu"])
    logvar = lin(h2, params["wlv"], params["blv"])
    z = mu + eps * jnp.exp(0.5 * logvar)
    h3 = jax.nn.relu(lin(z, params["w4"], params["b4"]))
    h4 = jax.nn.relu(lin(h3, params["w5"], params["b5"]))
    recon = jax.nn.sigmoid(lin(h4, params["w6"], params["b6"]))
    return recon, mu, logvar


if __name__ == "__main__":
    key = jax.random.PRNGKey(0)
    k_params, k_x, k_eps = jax.random.split(key, 3)

    params = init_params(k_params)
    prepped = prepare_params(params)
    fwd = jax.jit(vae_forward)

    # bf16 weights + bf16 x into the MXU -> relaxed tolerance vs. the f32 reference.
    ATOL = RTOL = 2e-2

    # Small batch (single grid step, no padding, no post-kernel slicing).
    B = 8
    x = jax.random.uniform(k_x, (B, INPUT_DIM), jnp.float32)   # MNIST-like pixels in [0,1)
    eps = jax.random.normal(k_eps, (B, LATENT_DIM), jnp.float32)
    recon, mu, logvar = jax.block_until_ready(fwd(x, prepped, eps))
    r_ref, mu_ref, lv_ref = vae_reference(x, params, eps)
    assert recon.shape == (B, INPUT_DIM) and recon.dtype == jnp.float32
    assert mu.shape == (B, LATENT_DIM) and logvar.shape == (B, LATENT_DIM)
    assert jnp.allclose(recon, r_ref, atol=ATOL, rtol=RTOL)
    assert jnp.allclose(mu, mu_ref, atol=ATOL, rtol=RTOL)
    assert jnp.allclose(logvar, lv_ref, atol=ATOL, rtol=RTOL)

    # Ragged batch (exercises multi-step grid + batch-tail padding: TB=104, Bp=208).
    B2 = 200
    x2 = jax.random.uniform(jax.random.fold_in(k_x, 1), (B2, INPUT_DIM), jnp.float32)
    eps2 = jax.random.normal(jax.random.fold_in(k_eps, 1), (B2, LATENT_DIM), jnp.float32)
    recon2, mu2, logvar2 = jax.block_until_ready(fwd(x2, prepped, eps2))
    r2_ref, mu2_ref, lv2_ref = vae_reference(x2, params, eps2)
    assert recon2.shape == (B2, INPUT_DIM)
    assert jnp.allclose(recon2, r2_ref, atol=ATOL, rtol=RTOL)
    assert jnp.allclose(mu2, mu2_ref, atol=ATOL, rtol=RTOL)
    assert jnp.allclose(logvar2, lv2_ref, atol=ATOL, rtol=RTOL)

    print("KERNEL_OK")
</pallas_src>

<mosaic_0001>
module attributes {stable_mosaic.version = 11 : i64} {
  func.func @vae_kernel(%arg0: i32, %arg1: memref<8x784xbf16, #tpu.memory_space<vmem>>, %arg2: memref<784x128xbf16, #tpu.memory_space<vmem>>, %arg3: memref<1x128xf32, #tpu.memory_space<vmem>>, %arg4: memref<128x64xbf16, #tpu.memory_space<vmem>>, %arg5: memref<1x64xf32, #tpu.memory_space<vmem>>, %arg6: memref<64x40xbf16, #tpu.memory_space<vmem>>, %arg7: memref<1x40xf32, #tpu.memory_space<vmem>>, %arg8: memref<20x64xbf16, #tpu.memory_space<vmem>>, %arg9: memref<1x64xf32, #tpu.memory_space<vmem>>, %arg10: memref<64x128xbf16, #tpu.memory_space<vmem>>, %arg11: memref<1x128xf32, #tpu.memory_space<vmem>>, %arg12: memref<128x784xbf16, #tpu.memory_space<vmem>>, %arg13: memref<1x784xf32, #tpu.memory_space<vmem>>, %arg14: memref<8x20xf32, #tpu.memory_space<vmem>>, %arg15: memref<8x784xf32, #tpu.memory_space<vmem>>, %arg16: memref<8x40xf32, #tpu.memory_space<vmem>>) attributes {dimension_semantics = [#tpu.dimension_semantics<parallel>], iteration_bounds = array<i64: 1>, scalar_prefetch = 0 : i64, scratch_operands = 0 : i64, tpu.core_type = #tpu.core_type<tc>, window_params = [{transform_indices = @transform_0, window_bounds = array<i64: 8, 784>}, {pipeline_mode = #tpu.pipeline_mode<synchronous>, transform_indices = @transform_1, window_bounds = array<i64: 784, 128>}, {pipeline_mode = #tpu.pipeline_mode<synchronous>, transform_indices = @transform_2, window_bounds = array<i64: 1, 128>}, {pipeline_mode = #tpu.pipeline_mode<synchronous>, transform_indices = @transform_3, window_bounds = array<i64: 128, 64>}, {pipeline_mode = #tpu.pipeline_mode<synchronous>, transform_indices = @transform_4, window_bounds = array<i64: 1, 64>}, {pipeline_mode = #tpu.pipeline_mode<synchronous>, transform_indices = @transform_5, window_bounds = array<i64: 64, 40>}, {pipeline_mode = #tpu.pipeline_mode<synchronous>, transform_indices = @transform_6, window_bounds = array<i64: 1, 40>}, {pipeline_mode = #tpu.pipeline_mode<synchronous>, transform_indices = @transform_7, window_bounds = array<i64: 20, 64>}, {pipeline_mode = #tpu.pipeline_mode<synchronous>, transform_indices = @transform_8, window_bounds = array<i64: 1, 64>}, {pipeline_mode = #tpu.pipeline_mode<synchronous>, transform_indices = @transform_9, window_bounds = array<i64: 64, 128>}, {pipeline_mode = #tpu.pipeline_mode<synchronous>, transform_indices = @transform_10, window_bounds = array<i64: 1, 128>}, {pipeline_mode = #tpu.pipeline_mode<synchronous>, transform_indices = @transform_11, window_bounds = array<i64: 128, 784>}, {pipeline_mode = #tpu.pipeline_mode<synchronous>, transform_indices = @transform_12, window_bounds = array<i64: 1, 784>}, {transform_indices = @transform_13, window_bounds = array<i64: 8, 20>}, {transform_indices = @transform_14, window_bounds = array<i64: 8, 784>}, {transform_indices = @transform_15, window_bounds = array<i64: 8, 40>}]} {
    %c0 = arith.constant 0 : index
    %c0_0 = arith.constant 0 : index
    %0 = vector.load %arg1[%c0, %c0_0] : memref<8x784xbf16, #tpu.memory_space<vmem>>, vector<8x784xbf16>
    %c0_1 = arith.constant 0 : index
    %c0_2 = arith.constant 0 : index
    %1 = vector.load %arg2[%c0_1, %c0_2] : memref<784x128xbf16, #tpu.memory_space<vmem>>, vector<784x128xbf16>
    %cst = arith.constant dense<0.000000e+00> : vector<8x128xf32>
    %2 = tpu.matmul %0, %1, %cst {dimension_numbers = #tpu.dot_dimension_numbers<[1], [0], [0], [1], [0, 0, 1, 1], [], []>} : vector<8x784xbf16>, vector<784x128xbf16>, vector<8x128xf32> -> vector<8x128xf32>
    %c0_3 = arith.constant 0 : index
    %c0_4 = arith.constant 0 : index
    %3 = vector.load %arg3[%c0_3, %c0_4] : memref<1x128xf32, #tpu.memory_space<vmem>>, vector<1x128xf32>
    %4 = vector.broadcast %3 : vector<1x128xf32> to vector<8x128xf32>
    %5 = arith.addf %2, %4 : vector<8x128xf32>
    %cst_5 = arith.constant 0.000000e+00 : f32
    %6 = vector.broadcast %cst_5 : f32 to vector<8x128xf32>
    %7 = arith.maximumf %5, %6 : vector<8x128xf32>
    %8 = arith.truncf %7 : vector<8x128xf32> to vector<8x128xbf16>
    %c0_6 = arith.constant 0 : index
    %c0_7 = arith.constant 0 : index
    %9 = vector.load %arg4[%c0_6, %c0_7] : memref<128x64xbf16, #tpu.memory_space<vmem>>, vector<128x64xbf16>
    %cst_8 = arith.constant dense<0.000000e+00> : vector<8x64xf32>
    %10 = tpu.matmul %8, %9, %cst_8 {dimension_numbers = #tpu.dot_dimension_numbers<[1], [0], [0], [1], [0, 0, 1, 1], [], []>} : vector<8x128xbf16>, vector<128x64xbf16>, vector<8x64xf32> -> vector<8x64xf32>
    %c0_9 = arith.constant 0 : index
    %c0_10 = arith.constant 0 : index
    %11 = vector.load %arg5[%c0_9, %c0_10] : memref<1x64xf32, #tpu.memory_space<vmem>>, vector<1x64xf32>
    %12 = vector.broadcast %11 : vector<1x64xf32> to vector<8x64xf32>
    %13 = arith.addf %10, %12 : vector<8x64xf32>
    %cst_11 = arith.constant 0.000000e+00 : f32
    %14 = vector.broadcast %cst_11 : f32 to vector<8x64xf32>
    %15 = arith.maximumf %13, %14 : vector<8x64xf32>
    %16 = arith.truncf %15 : vector<8x64xf32> to vector<8x64xbf16>
    %c0_12 = arith.constant 0 : index
    %c0_13 = arith.constant 0 : index
    %17 = vector.load %arg6[%c0_12, %c0_13] : memref<64x40xbf16, #tpu.memory_space<vmem>>, vector<64x40xbf16>
    %cst_14 = arith.constant dense<0.000000e+00> : vector<8x40xf32>
    %18 = tpu.matmul %16, %17, %cst_14 {dimension_numbers = #tpu.dot_dimension_numbers<[1], [0], [0], [1], [0, 0, 1, 1], [], []>} : vector<8x64xbf16>, vector<64x40xbf16>, vector<8x40xf32> -> vector<8x40xf32>
    %c0_15 = arith.constant 0 : index
    %c0_16 = arith.constant 0 : index
    %19 = vector.load %arg7[%c0_15, %c0_16] : memref<1x40xf32, #tpu.memory_space<vmem>>, vector<1x40xf32>
    %20 = vector.broadcast %19 : vector<1x40xf32> to vector<8x40xf32>
    %21 = arith.addf %18, %20 : vector<8x40xf32>
    %22 = vector.extract_strided_slice %21 {offsets = [0, 0], sizes = [8, 20], strides = [1, 1]} : vector<8x40xf32> to vector<8x20xf32>
    %23 = vector.extract_strided_slice %21 {offsets = [0, 20], sizes = [8, 20], strides = [1, 1]} : vector<8x40xf32> to vector<8x20xf32>
    %cst_17 = arith.constant 5.000000e-01 : f32
    %24 = vector.broadcast %cst_17 : f32 to vector<8x20xf32>
    %25 = arith.mulf %24, %23 : vector<8x20xf32>
    %26 = math.exp %25 : vector<8x20xf32>
    %c0_18 = arith.constant 0 : index
    %c0_19 = arith.constant 0 : index
    %27 = vector.load %arg14[%c0_18, %c0_19] : memref<8x20xf32, #tpu.memory_space<vmem>>, vector<8x20xf32>
    %28 = arith.mulf %27, %26 : vector<8x20xf32>
    %29 = arith.addf %22, %28 : vector<8x20xf32>
    %30 = arith.truncf %29 : vector<8x20xf32> to vector<8x20xbf16>
    %c0_20 = arith.constant 0 : index
    %c0_21 = arith.constant 0 : index
    %31 = vector.load %arg8[%c0_20, %c0_21] : memref<20x64xbf16, #tpu.memory_space<vmem>>, vector<20x64xbf16>
    %cst_22 = arith.constant dense<0.000000e+00> : vector<8x64xf32>
    %32 = tpu.matmul %30, %31, %cst_22 {dimension_numbers = #tpu.dot_dimension_numbers<[1], [0], [0], [1], [0, 0, 1, 1], [], []>} : vector<8x20xbf16>, vector<20x64xbf16>, vector<8x64xf32> -> vector<8x64xf32>
    %c0_23 = arith.constant 0 : index
    %c0_24 = arith.constant 0 : index
    %33 = vector.load %arg9[%c0_23, %c0_24] : memref<1x64xf32, #tpu.memory_space<vmem>>, vector<1x64xf32>
    %34 = vector.broadcast %33 : vector<1x64xf32> to vector<8x64xf32>
    %35 = arith.addf %32, %34 : vector<8x64xf32>
    %cst_25 = arith.constant 0.000000e+00 : f32
    %36 = vector.broadcast %cst_25 : f32 to vector<8x64xf32>
    %37 = arith.maximumf %35, %36 : vector<8x64xf32>
    %38 = arith.truncf %37 : vector<8x64xf32> to vector<8x64xbf16>
    %c0_26 = arith.constant 0 : index
    %c0_27 = arith.constant 0 : index
    %39 = vector.load %arg10[%c0_26, %c0_27] : memref<64x128xbf16, #tpu.memory_space<vmem>>, vector<64x128xbf16>
    %cst_28 = arith.constant dense<0.000000e+00> : vector<8x128xf32>
    %40 = tpu.matmul %38, %39, %cst_28 {dimension_numbers = #tpu.dot_dimension_numbers<[1], [0], [0], [1], [0, 0, 1, 1], [], []>} : vector<8x64xbf16>, vector<64x128xbf16>, vector<8x128xf32> -> vector<8x128xf32>
    %c0_29 = arith.constant 0 : index
    %c0_30 = arith.constant 0 : index
    %41 = vector.load %arg11[%c0_29, %c0_30] : memref<1x128xf32, #tpu.memory_space<vmem>>, vector<1x128xf32>
    %42 = vector.broadcast %41 : vector<1x128xf32> to vector<8x128xf32>
    %43 = arith.addf %40, %42 : vector<8x128xf32>
    %cst_31 = arith.constant 0.000000e+00 : f32
    %44 = vector.broadcast %cst_31 : f32 to vector<8x128xf32>
    %45 = arith.maximumf %43, %44 : vector<8x128xf32>
    %46 = arith.truncf %45 : vector<8x128xf32> to vector<8x128xbf16>
    %c0_32 = arith.constant 0 : index
    %c0_33 = arith.constant 0 : index
    %47 = vector.load %arg12[%c0_32, %c0_33] : memref<128x784xbf16, #tpu.memory_space<vmem>>, vector<128x784xbf16>
    %cst_34 = arith.constant dense<0.000000e+00> : vector<8x784xf32>
    %48 = tpu.matmul %46, %47, %cst_34 {dimension_numbers = #tpu.dot_dimension_numbers<[1], [0], [0], [1], [0, 0, 1, 1], [], []>} : vector<8x128xbf16>, vector<128x784xbf16>, vector<8x784xf32> -> vector<8x784xf32>
    %c0_35 = arith.constant 0 : index
    %c0_36 = arith.constant 0 : index
    %49 = vector.load %arg13[%c0_35, %c0_36] : memref<1x784xf32, #tpu.memory_space<vmem>>, vector<1x784xf32>
    %50 = vector.broadcast %49 : vector<1x784xf32> to vector<8x784xf32>
    %51 = arith.addf %48, %50 : vector<8x784xf32>
    %52 = arith.negf %51 : vector<8x784xf32>
    %53 = math.exp %52 : vector<8x784xf32>
    %cst_37 = arith.constant 1.000000e+00 : f32
    %54 = vector.broadcast %cst_37 : f32 to vector<8x784xf32>
    %55 = arith.addf %54, %53 : vector<8x784xf32>
    %56 = arith.divf %54, %55 : vector<8x784xf32>
    %c0_38 = arith.constant 0 : index
    %c0_39 = arith.constant 0 : index
    %57 = vector.load %arg15[%c0_38, %c0_39] : memref<8x784xf32, #tpu.memory_space<vmem>>, vector<8x784xf32>
    tpu.vector_store %arg15[%c0_38, %c0_39], %56 {strides = array<i32>} : memref<8x784xf32, #tpu.memory_space<vmem>>, vector<8x784xf32>,
    %c0_40 = arith.constant 0 : index
    %c0_41 = arith.constant 0 : index
    %58 = vector.load %arg16[%c0_40, %c0_41] : memref<8x40xf32, #tpu.memory_space<vmem>>, vector<8x40xf32>
    tpu.vector_store %arg16[%c0_40, %c0_41], %21 {strides = array<i32>} : memref<8x40xf32, #tpu.memory_space<vmem>>, vector<8x40xf32>,
    return
  }
  func.func @transform_0(%arg0: i32) -> (i32, i32) {
    %c0_i32 = arith.constant 0 : i32
    %c0_i32_0 = arith.constant 0 : i32
    return %arg0, %c0_i32 : i32, i32
  }
  func.func @transform_1(%arg0: i32) -> (i32, i32) {
    %c0_i32 = arith.constant 0 : i32
    %c0_i32_0 = arith.constant 0 : i32
    %c0_i32_1 = arith.constant 0 : i32
    return %c0_i32, %c0_i32_0 : i32, i32
  }
  func.func @transform_2(%arg0: i32) -> (i32, i32) {
    %c0_i32 = arith.constant 0 : i32
    %c0_i32_0 = arith.constant 0 : i32
    %c0_i32_1 = arith.constant 0 : i32
    return %c0_i32, %c0_i32_0 : i32, i32
  }
  func.func @transform_3(%arg0: i32) -> (i32, i32) {
    %c0_i32 = arith.constant 0 : i32
    %c0_i32_0 = arith.constant 0 : i32
    %c0_i32_1 = arith.constant 0 : i32
    return %c0_i32, %c0_i32_0 : i32, i32
  }
  func.func @transform_4(%arg0: i32) -> (i32, i32) {
    %c0_i32 = arith.constant 0 : i32
    %c0_i32_0 = arith.constant 0 : i32
    %c0_i32_1 = arith.constant 0 : i32
    return %c0_i32, %c0_i32_0 : i32, i32
  }
  func.func @transform_5(%arg0: i32) -> (i32, i32) {
    %c0_i32 = arith.constant 0 : i32
    %c0_i32_0 = arith.constant 0 : i32
    %c0_i32_1 = arith.constant 0 : i32
    return %c0_i32, %c0_i32_0 : i32, i32
  }
  func.func @transform_6(%arg0: i32) -> (i32, i32) {
    %c0_i32 = arith.constant 0 : i32
    %c0_i32_0 = arith.constant 0 : i32
    %c0_i32_1 = arith.constant 0 : i32
    return %c0_i32, %c0_i32_0 : i32, i32
  }
  func.func @transform_7(%arg0: i32) -> (i32, i32) {
    %c0_i32 = arith.constant 0 : i32
    %c0_i32_0 = arith.constant 0 : i32
    %c0_i32_1 = arith.constant 0 : i32
    return %c0_i32, %c0_i32_0 : i32, i32
  }
  func.func @transform_8(%arg0: i32) -> (i32, i32) {
    %c0_i32 = arith.constant 0 : i32
    %c0_i32_0 = arith.constant 0 : i32
    %c0_i32_1 = arith.constant 0 : i32
    return %c0_i32, %c0_i32_0 : i32, i32
  }
  func.func @transform_9(%arg0: i32) -> (i32, i32) {
    %c0_i32 = arith.constant 0 : i32
    %c0_i32_0 = arith.constant 0 : i32
    %c0_i32_1 = arith.constant 0 : i32
    return %c0_i32, %c0_i32_0 : i32, i32
  }
  func.func @transform_10(%arg0: i32) -> (i32, i32) {
    %c0_i32 = arith.constant 0 : i32
    %c0_i32_0 = arith.constant 0 : i32
    %c0_i32_1 = arith.constant 0 : i32
    return %c0_i32, %c0_i32_0 : i32, i32
  }
  func.func @transform_11(%arg0: i32) -> (i32, i32) {
    %c0_i32 = arith.constant 0 : i32
    %c0_i32_0 = arith.constant 0 : i32
    %c0_i32_1 = arith.constant 0 : i32
    return %c0_i32, %c0_i32_0 : i32, i32
  }
  func.func @transform_12(%arg0: i32) -> (i32, i32) {
    %c0_i32 = arith.constant 0 : i32
    %c0_i32_0 = arith.constant 0 : i32
    %c0_i32_1 = arith.constant 0 : i32
    return %c0_i32, %c0_i32_0 : i32, i32
  }
  func.func @transform_13(%arg0: i32) -> (i32, i32) {
    %c0_i32 = arith.constant 0 : i32
    %c0_i32_0 = arith.constant 0 : i32
    return %arg0, %c0_i32 : i32, i32
  }
  func.func @transform_14(%arg0: i32) -> (i32, i32) {
    %c0_i32 = arith.constant 0 : i32
    %c0_i32_0 = arith.constant 0 : i32
    return %arg0, %c0_i32 : i32, i32
  }
  func.func @transform_15(%arg0: i32) -> (i32, i32) {
    %c0_i32 = arith.constant 0 : i32
    %c0_i32_0 = arith.constant 0 : i32
    return %arg0, %c0_i32 : i32, i32
  }
}

</mosaic_0001>

<bundles_post_ra>
// kernel: vae_forward.1
= control target key start
LH: loop header
LB: loop body
LE: loop exit
PB: predicated region body
PF: predicated region fallthrough
CT: control target
= control target key end

     0   :  { %s2809_s0 = inlined_call_operand.vmem [shape: bf16[8,784], index: 0, kind: input, shape index: {}]   ;;  %s2810_s1 = inlined_call_operand.vmem [shape: bf16[784,128], index: 1, kind: input, shape index: {}]   ;;  %s2811_s2 = inlined_call_operand.vmem [shape: f32[1,128], index: 2, kind: input, shape index: {}]   ;;  %s2812_s3 = inlined_call_operand.vmem [shape: bf16[128,64], index: 3, kind: input, shape index: {}]   ;;  %s2813_s4 = inlined_call_operand.vmem [shape: f32[1,64], index: 4, kind: input, shape index: {}]   ;;  %s2814_s5 = inlined_call_operand.vmem [shape: bf16[64,40], index: 5, kind: input, shape index: {}]   ;;  %s2815_s6 = inlined_call_operand.vmem [shape: f32[1,40], index: 6, kind: input, shape index: {}]   ;;  %s2816_s7 = inlined_call_operand.vmem [shape: bf16[20,64], index: 7, kind: input, shape index: {}]   ;;  %s2817_s8 = inlined_call_operand.vmem [shape: f32[1,64], index: 8, kind: input, shape index: {}]   ;;  %s2818_s9 = inlined_call_operand.vmem [shape: bf16[64,128], index: 9, kind: input, shape index: {}]   ;;  %s2819_s10 = inlined_call_operand.vmem [shape: f32[1,128], index: 10, kind: input, shape index: {}]   ;;  %s2820_s11 = inlined_call_operand.vmem [shape: bf16[128,784], index: 11, kind: input, shape index: {}]   ;;  %s2821_s12 = inlined_call_operand.vmem [shape: f32[1,784], index: 12, kind: input, shape index: {}]   ;;  %s2822_s13 = inlined_call_operand.vmem [shape: f32[8,20], index: 13, kind: input, shape index: {}]   ;;  %s2823_s14 = inlined_call_operand.hbm [shape: f32[8,784], index: 14, kind: output, shape index: {0}]   ;;  %s2824_s15 = inlined_call_operand.vmem [shape: f32[8,40], index: 15, kind: output, shape index: {1}]  }
   0x1   :  { %v1939_v0 = vld [vmem:[%s2810_s1 + $0x38] sm:$0xff]  ;;  %v1938_v3 = vld [vmem:[%s2810_s1 + $0x30] sm:$0xff]  ;;  %v1937_v8 = vld [vmem:[%s2810_s1 + $0x28] sm:$0xff] }
   0x2   :  { %v1947_v1 = vld [vmem:[%s2810_s1 + $0x78] sm:$0xff]  ;;  %479 = vmatpush.bf16.msra.mxu0 %v1939_v0  ;;  %v1946_v4 = vld [vmem:[%s2810_s1 + $0x70] sm:$0xff]  ;;  %v1945_v9 = vld [vmem:[%s2810_s1 + $0x68] sm:$0xff] }
   0x3   :  { %v1955_v2 = vld [vmem:[%s2810_s1 + $0xb8] sm:$0xff]  ;;  %492 = vmatpush.bf16.msra.mxu1 %v1947_v1  ;;  %v1954_v5 = vld [vmem:[%s2810_s1 + $0xb0] sm:$0xff]  ;;  %v1953_v10 = vld [vmem:[%s2810_s1 + $0xa8] sm:$0xff] }
   0x4   :  { %505 = vmatpush.bf16.msra.mxu2 %v1955_v2  ;;  %v1963_v6 = vld [vmem:[%s2810_s1 + $0xf8] sm:$0xff]  ;;  %v1962_v7 = vld [vmem:[%s2810_s1 + $0xf0] sm:$0xff]  ;;  %v1961_v11 = vld [vmem:[%s2810_s1 + $0xe8] sm:$0xff] }
   0x5   :  { %518 = vmatpush.bf16.msra.mxu3 %v1963_v6  ;;  %v1936_v12 = vld [vmem:[%s2810_s1 + $0x20] sm:$0xff]  ;;  %v1935_v16 = vld [vmem:[%s2810_s1 + $0x18] sm:$0xff] }
   0x6   :  { %480 = vmatpush.bf16.msra.mxu0 %v1938_v3  ;;  %v1944_v13 = vld [vmem:[%s2810_s1 + $0x60] sm:$0xff]  ;;  %v1943_v17 = vld [vmem:[%s2810_s1 + $0x58] sm:$0xff] }
   0x7   :  { %493 = vmatpush.bf16.msra.mxu1 %v1946_v4  ;;  %v1952_v14 = vld [vmem:[%s2810_s1 + $0xa0] sm:$0xff]  ;;  %v1951_v18 = vld [vmem:[%s2810_s1 + $0x98] sm:$0xff] }
   0x8   :  { %506 = vmatpush.bf16.msra.mxu2 %v1954_v5  ;;  %v1960_v15 = vld [vmem:[%s2810_s1 + $0xe0] sm:$0xff]  ;;  %v1959_v19 = vld [vmem:[%s2810_s1 + $0xd8] sm:$0xff] }
   0x9   :  { %519 = vmatpush.bf16.msra.mxu3 %v1962_v7 }
   0xa   :  { %481 = vmatpush.bf16.msra.mxu0 %v1937_v8 }
   0xb   :  { %494 = vmatpush.bf16.msra.mxu1 %v1945_v9 }
   0xc   :  { %507 = vmatpush.bf16.msra.mxu2 %v1953_v10 }
   0xd   :  { %520 = vmatpush.bf16.msra.mxu3 %v1961_v11 }
   0xe   :  { %482 = vmatpush.bf16.msra.mxu0 %v1936_v12 }
   0xf   :  { %495 = vmatpush.bf16.msra.mxu1 %v1944_v13 }
  0x10   :  { %508 = vmatpush.bf16.msra.mxu2 %v1952_v14 }
  0x11   :  { %521 = vmatpush.bf16.msra.mxu3 %v1960_v15 }
  0x12   :  { %21 = vsyncpa [#allocation3], 0  ;;  %483 = vmatpush.bf16.msra.mxu0 %v1935_v16  ;;  %v1934_v20 = vld [vmem:[%s2810_s1 + $0x10] sm:$0xff]  ;;  %v1933_v24 = vld [vmem:[%s2810_s1 + $0x8] sm:$0xff]  ;;  %vm475_vm0 = vcmask 130048   ;;  %vm691_vm1 = vcmask 523264  }
  0x13   :  { %496 = vmatpush.bf16.msra.mxu1 %v1943_v17  ;;  %v1942_v21 = vld [vmem:[%s2810_s1 + $0x50] sm:$0xff]  ;;  %v1941_v25 = vld [vmem:[%s2810_s1 + $0x48] sm:$0xff]  ;;  %v51_v26 = vld [vmem:[%s2809_s0] sm:$0xff]  ;;  %vm739_vm2 = vcmask 1041408   ;;  %vm1411_vm3 = vcmask 326656   ;;  %s2117_s17 = smov 108  }
  0x14   :  { %509 = vmatpush.bf16.msra.mxu2 %v1951_v18  ;;  %v1950_v22 = vld [vmem:[%s2810_s1 + $0x90] sm:$0xff]  ;;  %v1949_v27 = vld [vmem:[%s2810_s1 + $0x88] sm:$0xff]  ;;  %v161_v29 = vunpack.c.l.b16 %v51_v26  ;;  %v162_v31 = vunpack.c.h.b16 %v51_v26  ;;  %v1932_v32 = vld [vmem:[%s2810_s1] sm:$0xff]  ;;  %vm735_vm4 = vcmask 162816  }
  0x15   :  { %522 = vmatpush.bf16.msra.mxu3 %v1959_v19  ;;  %v1958_v23 = vld [vmem:[%s2810_s1 + $0xd0] sm:$0xff]  ;;  %v52_v28 = vld [vmem:[%s2809_s0 + $0x8] sm:$0xff]  ;;  %v1940_v33 = vld [vmem:[%s2810_s1 + $0x40] sm:$0xff] }
  0x16   :  { %484 = vmatpush.bf16.msra.mxu0 %v1934_v20  ;;  %v1957_v30 = vld [vmem:[%s2810_s1 + $0xc8] sm:$0xff]  ;;  %v1971_v34 = vld [vmem:[%s2810_s1 + $0x138] sm:$0xff]  ;;  %v1948_v36 = vld [vmem:[%s2810_s1 + $0x80] sm:$0xff]  ;;  %v163_v37 = vunpack.c.l.b16 %v52_v28  ;;  %v168_v38 = vpack.c.b16 %v161_v29, %v161_v29  ;;  %v169_v39 = vpack.c.b16 %v162_v31, %v162_v31  ;;  %v164_v40 = vunpack.c.h.b16 %v52_v28 }
  0x17   :  { %497 = vmatpush.bf16.msra.mxu1 %v1942_v21  ;;  %v1979_v35 = vld [vmem:[%s2810_s1 + $0x178] sm:$0xff]  ;;  %v1956_v41 = vld [vmem:[%s2810_s1 + $0xc0] sm:$0xff]  ;;  %v1970_v43 = vld [vmem:[%s2810_s1 + $0x130] sm:$0xff] }
  0x18   :  { %510 = vmatpush.bf16.msra.mxu2 %v1950_v22  ;;  %v1980_v42 = vld [vmem:[%s2810_s1 + $0x180] sm:$0xff]  ;;  %v1978_v44 = vld [vmem:[%s2810_s1 + $0x170] sm:$0xff]  ;;  %v170_v45 = vpack.c.b16 %v163_v37, %v163_v37  ;;  %v171_v46 = vpack.c.b16 %v164_v40, %v164_v40  ;;  %v1969_v47 = vld [vmem:[%s2810_s1 + $0x128] sm:$0xff] }
  0x19   :  { %523 = vmatpush.bf16.msra.mxu3 %v1958_v23  ;;  %v1977_v48 = vld [vmem:[%s2810_s1 + $0x168] sm:$0xff]  ;;  %v1968_v49 = vld [vmem:[%s2810_s1 + $0x120] sm:$0xff]  ;;  %v54_v51 = vld [vmem:[%s2809_s0 + $0x18] sm:$0xf] }
  0x1a   :  { %485 = vmatpush.bf16.msra.mxu0 %v1933_v24  ;;  %v1976_v50 = vld [vmem:[%s2810_s1 + $0x160] sm:$0xff]  ;;  %v1967_v52 = vld [vmem:[%s2810_s1 + $0x118] sm:$0xff]  ;;  %v167_v54 = vunpack.c.l.b16 %v54_v51  ;;  %v1966_v55 = vld [vmem:[%s2810_s1 + $0x110] sm:$0xff] }
  0x1b   :  { %498 = vmatpush.bf16.msra.mxu1 %v1941_v25  ;;  %v1975_v53 = vld [vmem:[%s2810_s1 + $0x158] sm:$0xff]  ;;  %v1974_v56 = vld [vmem:[%s2810_s1 + $0x150] sm:$0xff]  ;;  %v1965_v58 = vld [vmem:[%s2810_s1 + $0x108] sm:$0xff] }
  0x1c   :  { %511 = vmatpush.bf16.msra.mxu2 %v1949_v27  ;;  %v174_v57 = vpack.c.b16 %v167_v54, %v167_v54  ;;  %v1973_v59 = vld [vmem:[%s2810_s1 + $0x148] sm:$0xff]  ;;  %v53_v60 = vld [vmem:[%s2809_s0 + $0x10] sm:$0xff]  ;;  %v1964_v63 = vld [vmem:[%s2810_s1 + $0x100] sm:$0xff] }
  0x1d   :  { %524 = vmatpush.bf16.msra.mxu3 %v1957_v30  ;;  %v165_v61 = vunpack.c.l.b16 %v53_v60  ;;  %v166_v62 = vunpack.c.h.b16 %v53_v60  ;;  %v1972_v0 = vld [vmem:[%s2810_s1 + $0x140] sm:$0xff]  ;;  %v1988_v3 = vld [vmem:[%s2812_s3 + $0x38] sm:$0xff]  ;;  %v1987_v4 = vld [vmem:[%s2812_s3 + $0x30] sm:$0xff] }
  0x1e   :  { %486 = vmatpush.bf16.msra.mxu0 %v1932_v32  ;;  %v1986_v5 = vld [vmem:[%s2812_s3 + $0x28] sm:$0xff]  ;;  %v1985_v6 = vld [vmem:[%s2812_s3 + $0x20] sm:$0xff]  ;;  %v1984_v7 = vld [vmem:[%s2812_s3 + $0x18] sm:$0xff] }
  0x1f   :  { %499 = vmatpush.bf16.msra.mxu1 %v1940_v33  ;;  %v172_v1 = vpack.c.b16 %v165_v61, %v165_v61  ;;  %v173_v2 = vpack.c.b16 %v166_v62, %v166_v62  ;;  %v1983_v8 = vld [vmem:[%s2812_s3 + $0x10] sm:$0xff]  ;;  %v1982_v9 = vld [vmem:[%s2812_s3 + $0x8] sm:$0xff]  ;;  %v1981_v12 = vld [vmem:[%s2812_s3] sm:$0xff] }
  0x20   :  { %512 = vmatpush.bf16.msra.mxu2 %v1948_v36  ;;  %v1992_v15 = vld [vmem:[%s2814_s5 + $0x18] sm:$0xff]  ;;  %v1991_v18 = vld [vmem:[%s2814_s5 + $0x10] sm:$0xff]  ;;  %v2056_v19 = vld [vmem:[%s2811_s2] ss:$0 sm:$0xff] }
  0x21   :  { %487 = vmatmul.bf16.vlgmr.msra.gmra.mxu0 %v168_v38  ;;  %525 = vmatpush.bf16.msra.mxu3 %v1956_v41  ;;  %v1990_v20 = vld [vmem:[%s2814_s5 + $0x8] sm:$0xff]  ;;  %v1989_v38 = vld [vmem:[%s2814_s5] sm:$0xff] }
  0x22   :  { %531 = vmatpush.bf16.msrb.mxu0 %v1971_v34  ;;  %500 = vmatmul.bf16.vlgmr.msra.gmra.mxu1 %v169_v39  ;;  %v2057_v39 = vld [vmem:[%s2813_s4] ss:$0 sm:$0xff] }
  0x23   :  { %544 = vmatpush.bf16.msrb.mxu1 %v1979_v35  ;;  %513 = vmatmul.bf16.vlgmr.msra.gmra.mxu2 %v170_v45  ;;  %v721_v45 = vld [vmem:[%s2816_s7 + $0x8] sm:$0x3]  ;;  %v711_v60 = vld [vmem:[%s2822_s13] sm:$0xff] }
  0x24   :  { %564 = vmatpush.bf16.msrb.mxu2 %v1980_v42  ;;  %526 = vmatmul.bf16.vlgmr.msra.gmra.mxu3 %v171_v46  ;;  %v731_v46 = vunpack.c.l.b16 %v721_v45  ;;  %v2019_v45 = vld [vmem:[%s2820_s11 + $0xac] sm:$0xf] }
  0x25   :  { %640 = vmatpush.bf16.msrb.mxu3 %v1988_v3  ;;  %v2050_v3 = vld [vmem:[%s2820_s11 + $0x1a0] sm:$0xf0] }
  0x26   :  { %532 = vmatpush.bf16.msrb.mxu0 %v1970_v43 }
  0x27   :  { %545 = vmatpush.bf16.msrb.mxu1 %v1978_v44 }
  0x28   :  { %699 = vmatpush.bf16.msra.mxu2 %v1992_v15  ;;  %v1873_v15 = vld [vmem:[%s2820_s11 + $0x16c] sm:$0xf0] }
  0x29   :  { %641 = vmatpush.bf16.msrb.mxu3 %v1987_v4  ;;  %v2047_v4 = vld [vmem:[%s2820_s11 + $0x18c] sm:$0xf] }
  0x2a   :  { %533 = vmatpush.bf16.msrb.mxu0 %v1969_v47  ;;  %v733_v47 = vpack.c.b16 %v731_v46, %v731_v46  ;;  %v1789_v46 = vld [vmem:[%s2820_s11 + $0xc4] sm:$0xf0] }
  0x2b   :  { %546 = vmatpush.bf16.msrb.mxu1 %v1977_v48 }
  0x2c   :  { %700 = vmatpush.bf16.msra.mxu2 %v1991_v18  ;;  %v741_v48 = vsel %vm739_vm2, %v733_v47, 0  ;;  %v1795_v47 = vld [vmem:[%s2820_s11 + $0xb0] sm:$0xf] }
  0x2d   :  { %642 = vmatpush.bf16.msrb.mxu3 %v1986_v5 }
  0x2e   :  { %534 = vmatpush.bf16.msrb.mxu0 %v1968_v49  ;;  %v1993_v49 = vld [vmem:[%s2816_s7] sm:$0xff] }
  0x2f   :  { %547 = vmatpush.bf16.msrb.mxu1 %v1976_v50  ;;  %v2058_v50 = vld [vmem:[%s2815_s6] ss:$0 sm:$0xff] }
  0x30   :  { %701 = vmatpush.bf16.msra.mxu2 %v1990_v20  ;;  %v1843_v20 = vld [vmem:[%s2820_s11 + $0x118] sm:$0xf] }
  0x31   :  { %643 = vmatpush.bf16.msrb.mxu3 %v1985_v6  ;;  %v1901_v6 = vld [vmem:[%s2820_s11 + $0x1a4] sm:$0xf0] }
  0x32   :  { %535 = vmatpush.bf16.msrb.mxu0 %v1967_v52 }
  0x33   :  { %548 = vmatpush.bf16.msrb.mxu1 %v1975_v53  ;;  %1629 = vmatmul.msk.bf16.vlgmr.msrb.gmra.mxu2 %vm475_vm0, %v174_v57  ;;  %v1997_v57 = vld [vmem:[%s2818_s9 + $0x18] sm:$0xff] }
  0x34   :  { %702 = vmatpush.bf16.msra.mxu2 %v1989_v38  ;;  %v2041_v38 = vld [vmem:[%s2820_s11 + $0x15c] sm:$0xf] }
  0x35   :  { %644 = vmatpush.bf16.msrb.mxu3 %v1984_v7  ;;  %v1907_v7 = vld [vmem:[%s2820_s11 + $0x190] sm:$0xf] }
  0x36   :  { %536 = vmatpush.bf16.msrb.mxu0 %v1966_v55 }
  0x37   :  { %549 = vmatpush.bf16.msrb.mxu1 %v1974_v56 }
  0x39   :  { %645 = vmatpush.bf16.msrb.mxu3 %v1983_v8  ;;  %v2051_v8 = vld [vmem:[%s2820_s11 + $0x1a8] sm:$0xf0] }
  0x3a   :  { %537 = vmatpush.bf16.msrb.mxu0 %v1965_v58  ;;  %v1996_v58 = vld [vmem:[%s2818_s9 + $0x10] sm:$0xff] }
  0x3b   :  { %550 = vmatpush.bf16.msrb.mxu1 %v1973_v59  ;;  %v1995_v59 = vld [vmem:[%s2818_s9 + $0x8] sm:$0xff] }
  0x3d   :  { %646 = vmatpush.bf16.msrb.mxu3 %v1982_v9  ;;  %v1904_v9 = vor.u32 %v2047_v4, %v1901_v6 }
  0x3e   :  { %538 = vmatpush.bf16.msrb.mxu0 %v1964_v63 }
  0x3f   :  { %551 = vmatpush.bf16.msrb.mxu1 %v1972_v0 }
  0x41   :  { %539 = vmatmul.bf16.vlgmr.msrb.gmra.mxu0 %v172_v1  ;;  %647 = vmatpush.bf16.msrb.mxu3 %v1981_v12  ;;  %v1994_v1 = vld [vmem:[%s2818_s9] sm:$0xff]  ;;  %v2043_v12 = vld [vmem:[%s2820_s11 + $0x168] sm:$0xf0] }
  0x42   :  { %552 = vmatmul.bf16.vlgmr.msrb.gmra.mxu1 %v173_v2  ;;  %v1899_v2 = vld [vmem:[%s2820_s11 + $0x188] sm:$0xf] }
  0x43   :  { %749 = vmatpush.bf16.msra.mxu1 %v741_v48  ;;  %v1900_v5 = vor.u32 %v2050_v3, %v1899_v2  ;;  %v1731_v2 = vld [vmem:[%s2820_s11 + $0x38] sm:$0xf]  ;;  %v2008_v3 = vld [vmem:[%s2820_s11 + $0x50] sm:$0xf0] }
  0x45   :  { %1180 = vmatpush.bf16.msrb.mxu2 %v1900_v5  ;;  %1193 = vmatpush.bf16.msra.mxu3 %v1904_v9  ;;  %v1797_v9 = vld [vmem:[%s2820_s11 + $0xcc] sm:$0xf0] }
  0x47   :  { %750 = vmatpush.bf16.msra.mxu1 %v1993_v49  ;;  %v2023_v49 = vld [vmem:[%s2820_s11 + $0xc8] sm:$0xf0] }
  0x4b   :  { %801 = vmatpush.bf16.msrb.mxu1 %v1997_v57  ;;  %v1796_v57 = vor.u32 %v2023_v49, %v1795_v47  ;;  %v2046_v47 = vld [vmem:[%s2820_s11 + $0x180] sm:$0xf0] }
  0x4f   :  { %802 = vmatpush.bf16.msrb.mxu1 %v1996_v58  ;;  %v2012_v58 = vld [vmem:[%s2820_s11 + $0x74] sm:$0xf] }
  0x53   :  { %803 = vmatpush.bf16.msrb.mxu1 %v1995_v59  ;;  %v2027_v59 = vld [vmem:[%s2820_s11 + $0xec] sm:$0xf] }
  0x57   :  { %804 = vmatpush.bf16.msrb.mxu1 %v1994_v1 }
  0x9e   :  { %v488_v10 = vpop.f32.mrf.mxu0 }
  0x9f   :  { %v501_v11 = vpop.f32.mrf.mxu1  ;;  %v489_v21 = vadd.f32 %v2056_v19, %v488_v10  ;;  %v1908_v10 = vor.u32 %v2051_v8, %v1907_v7  ;;  %v2005_v7 = vld [vmem:[%s2820_s11 + $0x3c] sm:$0xf]  ;;  %v2020_v8 = vld [vmem:[%s2820_s11 + $0xb4] sm:$0xf] }
  0xa1   :  { %v502_v24 = vadd.f32 %v501_v11, %v489_v21  ;;  %v1871_v11 = vld [vmem:[%s2820_s11 + $0x150] sm:$0xf]  ;;  %1206 = vmatpush.bf16.msra.mxu0 %v1908_v10  ;;  %v2036_v21 = vld [vmem:[%s2820_s11 + $0x130] sm:$0xf0]  ;;  %v1733_v10 = vld [vmem:[%s2820_s11 + $0x54] sm:$0xf0] }
  0xa6   :  { %v490_v13 = vpop.f32.mrf.mxu0  ;;  %v514_v16 = vpop.f32.mrf.mxu2 }
  0xa7   :  { %v503_v14 = vpop.f32.mrf.mxu1  ;;  %v527_v17 = vpop.f32.mrf.mxu3  ;;  %v515_v25 = vadd.f32 %v514_v16, %v502_v24  ;;  %v2040_v13 = vld [vmem:[%s2820_s11 + $0x154] sm:$0xf]  ;;  %v1879_v16 = vld [vmem:[%s2820_s11 + $0x158] sm:$0xf]  ;;  %v1851_v24 = vld [vmem:[%s2820_s11 + $0x120] sm:$0xf] }
  0xa8   :  { %v1872_v14 = vor.u32 %v2043_v12, %v1871_v11  ;;  %v1876_v18 = vor.u32 %v2040_v13, %v1873_v15  ;;  %v1739_v11 = vld [vmem:[%s2820_s11 + $0x40] sm:$0xf]  ;;  %v2009_v12 = vld [vmem:[%s2820_s11 + $0x58] sm:$0xf0]  ;;  %v1732_v13 = vor.u32 %v2008_v3, %v1731_v2  ;;  %v1831_v2 = vld [vmem:[%s2820_s11 + $0xf0] sm:$0xf] }
  0xa9   :  { %v528_v27 = vadd.f32 %v527_v17, %v515_v25  ;;  %v2044_v17 = vld [vmem:[%s2820_s11 + $0x170] sm:$0xf0]  ;;  %v2037_v25 = vld [vmem:[%s2820_s11 + $0x138] sm:$0xf0] }
  0xaa   :  { %v1880_v19 = vor.u32 %v2044_v17, %v1879_v16  ;;  %1181 = vmatpush.bf16.msrb.mxu2 %v1872_v14  ;;  %1194 = vmatpush.bf16.msra.mxu3 %v1876_v18  ;;  %v1703_v14 = vld [vmem:[%s2820_s11] sm:$0xf]  ;;  %v2001_v15 = vld [vmem:[%s2820_s11 + $0x18] sm:$0xf0]  ;;  %v1998_v16 = vld [vmem:[%s2820_s11 + $0x4] sm:$0xf]  ;;  %v1800_v17 = vor.u32 %v2020_v8, %v1797_v9 }
  0xab   :  { %v1839_v9 = vld [vmem:[%s2820_s11 + $0xf8] sm:$0xf] }
  0xac   :  { %1207 = vmatpush.bf16.msra.mxu0 %v1880_v19  ;;  %v1736_v19 = vor.u32 %v2005_v7, %v1733_v10  ;;  %v2032_v10 = vld [vmem:[%s2820_s11 + $0x110] sm:$0xf0] }
  0xae   :  { %v516_v22 = vpop.f32.mrf.mxu2 }
  0xaf   :  { %v529_v23 = vpop.f32.mrf.mxu3  ;;  %v2033_v22 = vld [vmem:[%s2820_s11 + $0x11c] sm:$0xf] }
  0xb0   :  { %v1845_v23 = vld [vmem:[%s2820_s11 + $0x134] sm:$0xf0] }
  0xb6   :  { %v566_v26 = vpop.f32.mrf.mxu2 }
  0xbe   :  { %v540_v28 = vpop.f32.mrf.mxu0  ;;  %v568_v32 = vpop.f32.mrf.mxu2 }
  0xbf   :  { %v553_v29 = vpop.f32.mrf.mxu1  ;;  %v541_v30 = vadd.f32 %v540_v28, %v528_v27  ;;  %v1815_v27 = vld [vmem:[%s2820_s11 + $0xe0] sm:$0xf]  ;;  %v2029_v28 = vld [vmem:[%s2820_s11 + $0xf8] sm:$0xf0]  ;;  %v2048_v32 = vld [vmem:[%s2820_s11 + $0x194] sm:$0xf] }
  0xc1   :  { %v554_v31 = vadd.f32 %v553_v29, %v541_v30  ;;  %v1848_v29 = vor.u32 %v2033_v22, %v1845_v23  ;;  %v1852_v30 = vor.u32 %v2037_v25, %v1851_v24  ;;  %v1711_v22 = vld [vmem:[%s2820_s11 + $0x8] sm:$0xf]  ;;  %v2002_v23 = vld [vmem:[%s2820_s11 + $0x20] sm:$0xf0]  ;;  %v1915_v25 = vld [vmem:[%s2820_s11 + $0x198] sm:$0xf] }
  0xc3   :  { %v567_v33 = vadd.f32 %v566_v26, %v554_v31  ;;  %v1844_v26 = vor.u32 %v2036_v21, %v1843_v20  ;;  %v2026_v31 = vld [vmem:[%s2820_s11 + $0xe4] sm:$0xf]  ;;  %1195 = vmatpush.bf16.msra.mxu3 %v1848_v29  ;;  %1208 = vmatpush.bf16.msra.mxu0 %v1852_v30  ;;  %v1740_v20 = vor.u32 %v2009_v12, %v1739_v11  ;;  %v1705_v21 = vld [vmem:[%s2820_s11 + $0x1c] sm:$0xf0]  ;;  %v2053_v30 = vld [vmem:[%s2820_s11 + $0x1b8] sm:$0xf0] }
  0xc4   :  { %v1923_v29 = vld [vmem:[%s2820_s11 + $0x1a0] sm:$0xf]  ;;  %v1840_v11 = vor.u32 %v2032_v10, %v1839_v9  ;;  %v1803_v12 = vld [vmem:[%s2820_s11 + $0xb8] sm:$0xf] }
  0xc5   :  { %v570_v34 = vmax.f32 %v567_v33, 0.0  ;;  %v1909_v33 = vld [vmem:[%s2820_s11 + $0x1ac] sm:$0xf0]  ;;  %1182 = vmatpush.bf16.msrb.mxu2 %v1844_v26  ;;  %v2052_v26 = vld [vmem:[%s2820_s11 + $0x1b0] sm:$0xf0] }
  0xc6   :  { %v542_v35 = vpop.f32.mrf.mxu0 }
  0xc7   :  { %v555_v36 = vpop.f32.mrf.mxu1  ;;  %v571_v37 = vpack.c.bf16 %v570_v34, %v570_v34  ;;  %v1817_v34 = vld [vmem:[%s2820_s11 + $0xfc] sm:$0xf0]  ;;  %v1823_v35 = vld [vmem:[%s2820_s11 + $0xe8] sm:$0xf] }
  0xc8   :  { %v2030_v36 = vld [vmem:[%s2820_s11 + $0x100] sm:$0xf0] }
  0xc9   :  { %648 = vmatmul.bf16.vlgmr.msrb.gmra.mxu3 %v571_v37  ;;  %v1912_v37 = vor.u32 %v2048_v32, %v1909_v33  ;;  %v1704_v32 = vor.u32 %v2001_v15, %v1703_v14  ;;  %v2013_v33 = vld [vmem:[%s2820_s11 + $0x7c] sm:$0xf] }
  0xca   :  { %v2021_v14 = vld [vmem:[%s2820_s11 + $0xbc] sm:$0xf] }
 0x14c   :  { %v649_v40 = vpop.f32.mrf.mxu3 }
 0x14d   :  { %v650_v41 = vadd.f32 %v2057_v39, %v649_v40  ;;  %v1816_v39 = vor.u32 %v2029_v28, %v1815_v27  ;;  %v1787_v40 = vld [vmem:[%s2820_s11 + $0xa8] sm:$0xf]  ;;  %v2049_v27 = vld [vmem:[%s2820_s11 + $0x19c] sm:$0xf]  ;;  %v1917_v28 = vld [vmem:[%s2820_s11 + $0x1b4] sm:$0xf0] }
 0x14f   :  { %v653_v42 = vmax.f32 %v650_v41, 0.0  ;;  %v2022_v41 = vld [vmem:[%s2820_s11 + $0xc0] sm:$0xf0]  ;;  %1183 = vmatpush.bf16.msrb.mxu2 %v1816_v39  ;;  %v1920_v39 = vor.u32 %v2049_v27, %v1917_v28 }
 0x150   :  { %v2018_v27 = vld [vmem:[%s2820_s11 + $0xa0] sm:$0xf0] }
 0x151   :  { %v654_v43 = vpack.c.bf16 %v653_v42, %v653_v42  ;;  %v1881_v42 = vld [vmem:[%s2820_s11 + $0x174] sm:$0xf0] }
 0x152   :  { %v1884_v48 = vor.u32 %v2041_v38, %v1881_v42  ;;  %v1916_v38 = vor.u32 %v2052_v26, %v1915_v25  ;;  %v1777_v25 = vld [vmem:[%s2820_s11 + $0x9c] sm:$0xf0]  ;;  %v1783_v26 = vld [vmem:[%s2820_s11 + $0x88] sm:$0xf] }
 0x153   :  { %1678 = vmatmul.msk.bf16.vlgmr.msra.gmra.mxu2 %vm691_vm1, %v654_v43  ;;  %v1820_v43 = vor.u32 %v2026_v31, %v1817_v34  ;;  %v1769_v34 = vld [vmem:[%s2820_s11 + $0x94] sm:$0xf0] }
 0x154   :  { %v651_v44 = vpop.f32.mrf.mxu3  ;;  %v1772_v42 = vor.u32 %v2013_v33, %v1769_v34  ;;  %v1749_v33 = vld [vmem:[%s2820_s11 + $0x64] sm:$0xf0]  ;;  %v1755_v34 = vld [vmem:[%s2820_s11 + $0x50] sm:$0xf] }
 0x155   :  { %v1824_v44 = vor.u32 %v2030_v36, %v1823_v35  ;;  %1196 = vmatpush.bf16.msra.mxu3 %v1820_v43  ;;  %v1708_v35 = vor.u32 %v1998_v16, %v1705_v21  ;;  %v1712_v36 = vor.u32 %v2002_v23, %v1711_v22  ;;  %v2045_v43 = vld [vmem:[%s2820_s11 + $0x178] sm:$0xf0]  ;;  %v1805_v16 = vld [vmem:[%s2820_s11 + $0xd4] sm:$0xf0]  ;;  %v1775_v21 = vld [vmem:[%s2820_s11 + $0x80] sm:$0xf] }
 0x156   :  { %v2017_v22 = vld [vmem:[%s2820_s11 + $0x98] sm:$0xf0]  ;;  %v2014_v23 = vld [vmem:[%s2820_s11 + $0x84] sm:$0xf] }
 0x157   :  { %1209 = vmatpush.bf16.msra.mxu0 %v1824_v44  ;;  %v2042_v44 = vld [vmem:[%s2820_s11 + $0x164] sm:$0xf]  ;;  %v1780_v28 = vor.u32 %v2014_v23, %v1777_v25 }
 0x15b   :  { %1210 = vmatpush.bf16.msra.mxu0 %v1796_v57  ;;  %v2035_v57 = vld [vmem:[%s2820_s11 + $0x12c] sm:$0xf] }
 0x1d6   :  { %v704_v51 = vpop.f32.mrf.mxu2 }
 0x1d7   :  { %v705_v52 = vadd.f32 %v2058_v50, %v704_v51  ;;  %v2034_v50 = vld [vmem:[%s2820_s11 + $0x124] sm:$0xf]  ;;  %v1853_v51 = vld [vmem:[%s2820_s11 + $0x13c] sm:$0xf0] }
 0x1d9   :  { %v708_v53 = vmul.f32 0.5, %v705_v52  ;;  %1412 = vst.msk [vmem:[%s2824_s15] sm:$0xff] %vm1411_vm3, %v705_v52 }
 0x1db   :  { %v709_v54 = vmul.f32 1.442695, %v708_v53  ;;  %v1759_v53 = vld [vmem:[%s2820_s11 + $0x70] sm:$0xf] }
 0x1dd   :  { %2061 = vpow2.f32 %v709_v54  ;;  %v2015_v54 = vld [vmem:[%s2820_s11 + $0x88] sm:$0xf0] }
 0x1de   :  { %v706_v55 = vpop.f32.mrf.mxu2  ;;  %v1760_v1 = vor.u32 %v2015_v54, %v1759_v53  ;;  %v1741_v53 = vld [vmem:[%s2820_s11 + $0x5c] sm:$0xf0]  ;;  %v1859_v54 = vld [vmem:[%s2820_s11 + $0x128] sm:$0xf] }
 0x1df   :  { %v1856_v55 = vor.u32 %v2034_v50, %v1853_v51 }
 0x1e3   :  { %v2062_v56 = vpop.eup %2061 }
 0x1e4   :  { %713 = vrot.lane.b32.xlu0 %v2062_v56, %s2117_s17  ;;  %v1792_v56 = vor.u32 %v2019_v45, %v1789_v46  ;;  %v1889_v45 = vld [vmem:[%s2820_s11 + $0x17c] sm:$0xf0]  ;;  %v1895_v46 = vld [vmem:[%s2820_s11 + $0x168] sm:$0xf] }
 0x1e5   :  { %v1892_v50 = vor.u32 %v2042_v44, %v1889_v45  ;;  %v1896_v51 = vor.u32 %v2046_v47, %v1895_v46  ;;  %v2004_v44 = vld [vmem:[%s2820_s11 + $0x30] sm:$0xf0] }
 0x1e6   :  { %1197 = vmatpush.bf16.msra.mxu3 %v1792_v56  ;;  %v2038_v56 = vld [vmem:[%s2820_s11 + $0x140] sm:$0xf0] }
 0x256   :  { %v714_v61 = vpop.permute.xlu0 %713 }
 0x257   :  { %v716_v62 = vmul.f32 %v714_v61, %v711_v60  ;;  %v1825_v60 = vld [vmem:[%s2820_s11 + $0x104] sm:$0xf0]  ;;  %v1761_v61 = vld [vmem:[%s2820_s11 + $0x8c] sm:$0xf0] }
 0x258   :  { %v1828_v4 = vor.u32 %v2027_v59, %v1825_v60  ;;  %v1764_v5 = vor.u32 %v2012_v58, %v1761_v61  ;;  %v1861_v58 = vld [vmem:[%s2820_s11 + $0x144] sm:$0xf0]  ;;  %v1860_v59 = vor.u32 %v2038_v56, %v1859_v54  ;;  %v1867_v61 = vld [vmem:[%s2820_s11 + $0x130] sm:$0xf]  ;;  %v876_v54 = vld [vmem:[%s2821_s12] sm:$0x7f] }
 0x259   :  { %v717_v63 = vadd.f32 %v716_v62, %v705_v52  ;;  %v1788_v52 = vor.u32 %v2022_v41, %v1787_v40  ;;  %v1767_v62 = vld [vmem:[%s2820_s11 + $0x78] sm:$0xf]  ;;  %v1887_v40 = vld [vmem:[%s2820_s11 + $0x160] sm:$0xf]  ;;  %v1924_v41 = vor.u32 %v2053_v30, %v1923_v29  ;;  %v1864_v60 = vor.u32 %v2035_v57, %v1861_v58  ;;  %v1747_v30 = vld [vmem:[%s2820_s11 + $0x48] sm:$0xf] }
 0x25a   :  { %1198 = vmatpush.bf16.msra.mxu3 %v1764_v5  ;;  %v1888_v49 = vor.u32 %v2045_v43, %v1887_v40  ;;  %v2028_v5 = vld [vmem:[%s2820_s11 + $0xf4] sm:$0xf]  ;;  %v1784_v29 = vor.u32 %v2018_v27, %v1783_v26  ;;  %v2003_v40 = vld [vmem:[%s2820_s11 + $0x28] sm:$0xf0]  ;;  %v1727_v43 = vld [vmem:[%s2820_s11 + $0x18] sm:$0xf] }
 0x25b   :  { %v718_v0 = vpack.c.bf16 %v717_v63, %v717_v63  ;;  %v2016_v63 = vld [vmem:[%s2820_s11 + $0x90] sm:$0xf0]  ;;  %1184 = vmatpush.bf16.msrb.mxu2 %v1788_v52  ;;  %v2006_v52 = vld [vmem:[%s2820_s11 + $0x44] sm:$0xf]  ;;  %v1728_v47 = vor.u32 %v2004_v44, %v1727_v43  ;;  %v881_v56 = vperm.slane %v876_v54, 3  ;;  %v883_v23 = vperm.slane %v876_v54, 5 }
 0x25c   :  { %v1768_v6 = vor.u32 %v2016_v63, %v1767_v62  ;;  %v2039_v62 = vld [vmem:[%s2820_s11 + $0x148] sm:$0xf0] }
 0x25d   :  { %1683 = vmatmul.msk.bf16.vlgmr.msra.gmra.mxu1 %vm735_vm4, %v718_v0  ;;  %v2059_v0 = vld [vmem:[%s2817_s8] ss:$0 sm:$0xff]  ;;  %v1868_v63 = vor.u32 %v2039_v62, %v1867_v61  ;;  %v878_v61 = vperm.slane %v876_v54, 0  ;;  %v879_v62 = vperm.slane %v876_v54, 1  ;;  %s1420_s8 = sshll.u32 %s2823_s14, 4  ;;  %s1421_s8 = int_to_ptr.hbm [resolvable:$true] %s1420_s8 }
 0x25e   :  { %1219 = vmatpush.bf16.msra.mxu1 %v1912_v37  ;;  %1211 = vmatpush.bf16.msra.mxu0 %v1768_v6  ;;  %v1833_v6 = vld [vmem:[%s2820_s11 + $0x10c] sm:$0xf0] }
 0x25f   :  { %1185 = vmatpush.bf16.msrb.mxu2 %v1760_v1  ;;  %1199 = vmatpush.bf16.msra.mxu3 %v1736_v19  ;;  %v1713_v1 = vld [vmem:[%s2820_s11 + $0x24] sm:$0xf0]  ;;  %v1836_v8 = vor.u32 %v2028_v5, %v1833_v6  ;;  %v1808_v19 = vor.u32 %v2021_v14, %v1805_v16 }
 0x262   :  { %1220 = vmatpush.bf16.msra.mxu1 %v1884_v48  ;;  %1212 = vmatpush.bf16.msra.mxu0 %v1740_v20 }
 0x263   :  { %1186 = vmatpush.bf16.msrb.mxu2 %v1732_v13  ;;  %1200 = vmatpush.bf16.msra.mxu3 %v1708_v35  ;;  %v2024_v13 = vld [vmem:[%s2820_s11 + $0xd0] sm:$0xf0]  ;;  %v2011_v35 = vld [vmem:[%s2820_s11 + $0x68] sm:$0xf0] }
 0x264   :  { %v1804_v15 = vor.u32 %v2024_v13, %v1803_v12 }
 0x266   :  { %1221 = vmatpush.bf16.msra.mxu1 %v1856_v55  ;;  %1213 = vmatpush.bf16.msra.mxu0 %v1712_v36  ;;  %v1744_v55 = vor.u32 %v2006_v52, %v1741_v53 }
 0x267   :  { %1187 = vmatpush.bf16.msrb.mxu2 %v1704_v32  ;;  %1245 = vmatpush.bf16.msrb.mxu3 %v1920_v39  ;;  %v2007_v32 = vld [vmem:[%s2820_s11 + $0x4c] sm:$0xf]  ;;  %v1719_v39 = vld [vmem:[%s2820_s11 + $0x10] sm:$0xf] }
 0x268   :  { %v1720_v45 = vor.u32 %v2003_v40, %v1719_v39 }
 0x26a   :  { %1222 = vmatpush.bf16.msra.mxu1 %v1828_v4  ;;  %1258 = vmatpush.bf16.msrb.mxu0 %v1924_v41  ;;  %v2031_v4 = vld [vmem:[%s2820_s11 + $0x108] sm:$0xf0]  ;;  %v2000_v41 = vld [vmem:[%s2820_s11 + $0x14] sm:$0xf] }
 0x26b   :  { %1232 = vmatpush.bf16.msra.mxu2 %v1916_v38  ;;  %1246 = vmatpush.bf16.msrb.mxu3 %v1892_v50  ;;  %v1832_v7 = vor.u32 %v2031_v4, %v1831_v2  ;;  %v1756_v38 = vor.u32 %v2011_v35, %v1755_v34 }
 0x26e   :  { %1223 = vmatpush.bf16.msra.mxu1 %v1800_v17  ;;  %1259 = vmatpush.bf16.msrb.mxu0 %v1896_v51  ;;  %v1811_v17 = vld [vmem:[%s2820_s11 + $0xc0] sm:$0xf] }
 0x26f   :  { %1233 = vmatpush.bf16.msra.mxu2 %v1888_v49  ;;  %1247 = vmatpush.bf16.msrb.mxu3 %v1864_v60 }
 0x272   :  { %1224 = vmatpush.bf16.msra.mxu1 %v1772_v42  ;;  %1260 = vmatpush.bf16.msrb.mxu0 %v1868_v63  ;;  %v1721_v42 = vld [vmem:[%s2820_s11 + $0x2c] sm:$0xf0] }
 0x273   :  { %1234 = vmatpush.bf16.msra.mxu2 %v1860_v59  ;;  %1248 = vmatpush.bf16.msrb.mxu3 %v1836_v8  ;;  %v1724_v46 = vor.u32 %v2000_v41, %v1721_v42 }
 0x276   :  { %1225 = vmatpush.bf16.msra.mxu1 %v1744_v55  ;;  %1261 = vmatpush.bf16.msrb.mxu0 %v1840_v11  ;;  %v880_v55 = vperm.slane %v876_v54, 2 }
 0x277   :  { %1235 = vmatpush.bf16.msra.mxu2 %v1832_v7  ;;  %1249 = vmatpush.bf16.msrb.mxu3 %v1808_v19 }
 0x27b   :  { %1236 = vmatpush.bf16.msra.mxu2 %v1804_v15  ;;  %1250 = vmatpush.bf16.msrb.mxu3 %v1780_v28  ;;  %v884_v15 = vperm.slane %v876_v54, 6 }
 0x2da   :  { %v752_v18 = vpop.f32.mrf.mxu1 }
 0x2db   :  { %v753_v24 = vadd.f32 %v2059_v0, %v752_v18  ;;  %v1999_v0 = vld [vmem:[%s2820_s11 + $0xc] sm:$0xf]  ;;  %v2025_v18 = vld [vmem:[%s2820_s11 + $0xd8] sm:$0xf0] }
 0x2dc   :  { %v1716_v3 = vor.u32 %v1999_v0, %v1713_v1  ;;  %v1812_v20 = vor.u32 %v2025_v18, %v1811_v17 }
 0x2dd   :  { %v756_v31 = vmax.f32 %v753_v24, 0.0  ;;  %v1776_v24 = vor.u32 %v2017_v22, %v1775_v21  ;;  %v882_v22 = vperm.slane %v876_v54, 4 }
 0x2de   :  { %1226 = vmatpush.bf16.msra.mxu1 %v1716_v3  ;;  %1262 = vmatpush.bf16.msrb.mxu0 %v1812_v20 }
 0x2df   :  { %v757_v37 = vpack.c.bf16 %v756_v31, %v756_v31  ;;  %v2010_v31 = vld [vmem:[%s2820_s11 + $0x60] sm:$0xf0]  ;;  %1237 = vmatpush.bf16.msra.mxu2 %v1776_v24 }
 0x2e0   :  { %v1748_v36 = vor.u32 %v2010_v31, %v1747_v30 }
 0x2e1   :  { %1700 = vmatmul.msk.bf16.vlgmr.msrb.gmra.mxu1 %vm691_vm1, %v757_v37  ;;  %v1752_v37 = vor.u32 %v2007_v32, %v1749_v33 }
 0x2e2   :  { %v754_v48 = vpop.f32.mrf.mxu1  ;;  %1263 = vmatpush.bf16.msrb.mxu0 %v1784_v29 }
 0x2e3   :  { %1238 = vmatpush.bf16.msra.mxu2 %v1748_v36  ;;  %1251 = vmatpush.bf16.msrb.mxu3 %v1752_v37  ;;  %v2060_v48 = vld [vmem:[%s2819_s10] ss:$0 sm:$0xff]  ;;  %s2118_s10 = smov [#allocation2]  }
 0x2e4   :  { %s1418_s12 = sshll.u32 %s2118_s10, 4  ;;  %s1419_s12 = int_to_ptr.vmem [resolvable:$true] %s1418_s12 }
 0x2e6   :  { %1264 = vmatpush.bf16.msrb.mxu0 %v1756_v38 }
 0x2e7   :  { %1239 = vmatpush.bf16.msra.mxu2 %v1720_v45  ;;  %1252 = vmatpush.bf16.msrb.mxu3 %v1724_v46 }
 0x2ea   :  { %1265 = vmatpush.bf16.msrb.mxu0 %v1728_v47 }
 0x35e   :  { %v806_v49 = vpop.f32.mrf.mxu1 }
 0x35f   :  { %v807_v50 = vadd.f32 %v2060_v48, %v806_v49 }
 0x361   :  { %v810_v51 = vmax.f32 %v807_v50, 0.0 }
 0x363   :  { %v811_v52 = vpack.c.bf16 %v810_v51, %v810_v51 }
 0x365   :  { %1188 = vmatmul.bf16.vlgmr.msrb.gmra.mxu2 %v811_v52  ;;  %1201 = vmatmul.bf16.vlgmr.msra.gmra.mxu3 %v811_v52 }
 0x366   :  { %1214 = vmatmul.bf16.vlgmr.msra.gmra.mxu0 %v811_v52  ;;  %1227 = vmatmul.bf16.vlgmr.msra.gmra.mxu1 %v811_v52  ;;  %v808_v53 = vpop.f32.mrf.mxu1 }
 0x375   :  { %1240 = vmatmul.bf16.vlgmr.msra.gmra.mxu2 %v811_v52  ;;  %1253 = vmatmul.bf16.vlgmr.msrb.gmra.mxu3 %v811_v52 }
 0x376   :  { %1266 = vmatmul.bf16.vlgmr.msrb.gmra.mxu0 %v811_v52 }
 0x3e3   :  { %v1215_v57 = vpop.f32.mrf.mxu0  ;;  %v1228_v58 = vpop.f32.mrf.mxu1 }
 0x3e4   :  { %v1216_v59 = vadd.f32 %v1215_v57, %v880_v55  ;;  %v1229_v60 = vadd.f32 %v1228_v58, %v881_v56 }
 0x3e6   :  { %v1927_v63 = vmul.f32 -1.442695, %v1216_v59  ;;  %v1928_v0 = vmul.f32 -1.442695, %v1229_v60 }
 0x3e8   :  { %2063 = vpow2.f32 %v1927_v63  ;;  %v1189_v1 = vpop.f32.mrf.mxu2  ;;  %v1202_v2 = vpop.f32.mrf.mxu3 }
 0x3e9   :  { %2065 = vpow2.f32 %v1928_v0  ;;  %v1190_v3 = vadd.f32 %v1189_v1, %v878_v61  ;;  %v1203_v4 = vadd.f32 %v1202_v2, %v879_v62 }
 0x3eb   :  { %v1925_v5 = vmul.f32 -1.442695, %v1190_v3  ;;  %v1926_v6 = vmul.f32 -1.442695, %v1203_v4  ;;  %v1217_v7 = vpop.f32.mrf.mxu0  ;;  %v1230_v8 = vpop.f32.mrf.mxu1 }
 0x3ed   :  { %2067 = vpow2.f32 %v1925_v5 }
 0x3ee   :  { %v2064_v9 = vpop.eup %2063  ;;  %2069 = vpow2.f32 %v1926_v6 }
 0x3ef   :  { %v2066_v10 = vpop.eup %2065  ;;  %v1294_v11 = vadd.f32 1.0, %v2064_v9 }
 0x3f0   :  { %v1295_v12 = vadd.f32 1.0, %v2066_v10  ;;  %v1191_v13 = vpop.f32.mrf.mxu2  ;;  %v1204_v14 = vpop.f32.mrf.mxu3 }
 0x3f1   :  { %2071 = vrcp.f32 %v1294_v11  ;;  %v1338_v25 = vand.u32 2147483647, %v1294_v11  ;;  %v1340_v26 = vand.u32 2147483648, %v1294_v11  ;;  %vm1334_vm5 = vweird.f32 %v1294_v11 }
 0x3f2   :  { %2073 = vrcp.f32 %v1295_v12  ;;  %vm1349_vm6 = vweird.f32 %v1295_v12  ;;  %v1353_v32 = vand.u32 2147483647, %v1295_v12  ;;  %v1355_v33 = vand.u32 2147483648, %v1295_v12 }
 0x3f3   :  { %v2068_v16 = vpop.eup %2067  ;;  %v1267_v17 = vpop.f32.mrf.mxu0  ;;  %vm2781_vm8 = vcmp.eq.f32.partialorder %v1338_v25, 8.507059e+37  ;;  %v1341_v39 = vor.u32 1.1754944e-38, %v1340_v26 }
 0x3f4   :  { %v2070_v18 = vpop.eup %2069  ;;  %v2775_v19 = vadd.f32 1.0, %v2068_v16  ;;  %v1268_v21 = vadd.f32 %v1267_v17, %v884_v15  ;;  %vm2785_vm10 = vcmp.eq.f32.partialorder %v1353_v32, 8.507059e+37  ;;  %v1356_v51 = vor.u32 1.1754944e-38, %v1355_v33 }
 0x3f5   :  { %v2777_v20 = vadd.f32 1.0, %v2070_v18 }
 0x3f6   :  { %2075 = vrcp.f32 %v2775_v19  ;;  %v1931_v35 = vmul.f32 -1.442695, %v1268_v21  ;;  %v1308_v55 = vand.u32 2147483647, %v2775_v19  ;;  %v1310_v57 = vand.u32 2147483648, %v2775_v19 }
 0x3f7   :  { %v2072_v24 = vpop.eup %2071  ;;  %2077 = vrcp.f32 %v2777_v20  ;;  %v1325_v59 = vand.u32 2147483648, %v2777_v20  ;;  %v1323_v4 = vand.u32 2147483647, %v2777_v20  ;;  %vm1304_vm15 = vweird.f32 %v2775_v19 }
 0x3f8   :  { %v2074_v27 = vpop.eup %2073  ;;  %v1330_v28 = vmul.f32 %v2072_v24, %v1294_v11  ;;  %v1241_v29 = vpop.f32.mrf.mxu2  ;;  %vm1335_vm7 = vweird.f32 %v2072_v24  ;;  %2079 = vpow2.f32 %v1931_v35  ;;  %v1311_v8 = vor.u32 1.1754944e-38, %v1310_v57 }
 0x3f9   :  { %v1254_v30 = vpop.f32.mrf.mxu3  ;;  %v1345_v31 = vmul.f32 %v2074_v27, %v1295_v12  ;;  %v1242_v36 = vadd.f32 %v1241_v29, %v882_v22  ;;  %vm1350_vm9 = vweird.f32 %v2074_v27  ;;  %vm1336_vm11 = vmor %vm1334_vm5, %vm1335_vm7  ;;  %vm1319_vm2 = vweird.f32 %v2777_v20 }
 0x3fa   :  { %v1331_v34 = vsub.f32 1.0, %v1330_v28  ;;  %v1255_v37 = vadd.f32 %v1254_v30, %v883_v23  ;;  %vm1351_vm12 = vmor %vm1349_vm6, %vm1350_vm9  ;;  %vm1309_vm3 = vcmp.eq.f32.partialorder %v1308_v55, 8.507059e+37  ;;  %v1326_v12 = vor.u32 1.1754944e-38, %v1325_v59 }
 0x3fb   :  { %v1346_v40 = vsub.f32 1.0, %v1345_v31  ;;  %v1269_v41 = vpop.f32.mrf.mxu0  ;;  %v1929_v44 = vmul.f32 -1.442695, %v1242_v36  ;;  %vm1324_vm5 = vcmp.eq.f32.partialorder %v1323_v4, 8.507059e+37 }
 0x3fc   :  { %v2076_v42 = vpop.eup %2075  ;;  %v1332_v43 = vmul.f32 %v2072_v24, %v1331_v34  ;;  %v1930_v45 = vmul.f32 -1.442695, %v1255_v37 }
 0x3fd   :  { %v2078_v46 = vpop.eup %2077  ;;  %v1347_v47 = vmul.f32 %v2074_v27, %v1346_v40  ;;  %v1300_v49 = vmul.f32 %v2076_v42, %v2775_v19  ;;  %2081 = vpow2.f32 %v1929_v44  ;;  %vm1305_vm13 = vweird.f32 %v2076_v42 }
 0x3fe   :  { %v1333_v50 = vadd.f32 %v2072_v24, %v1332_v43  ;;  %v1315_v52 = vmul.f32 %v2078_v46, %v2777_v20  ;;  %2083 = vpow2.f32 %v1930_v45  ;;  %v2080_v1 = vpop.eup %2079  ;;  %vm1320_vm14 = vweird.f32 %v2078_v46  ;;  %vm1306_vm1 = vmor %vm1304_vm15, %vm1305_vm13 }
 0x3ff   :  { %v1348_v53 = vadd.f32 %v2074_v27, %v1347_v47  ;;  %v1301_v54 = vsub.f32 1.0, %v1300_v49  ;;  %v1298_v6 = vadd.f32 1.0, %v2080_v1  ;;  %vm1321_vm4 = vmor %vm1319_vm2, %vm1320_vm14 }
 0x400   :  { %v1337_v56 = vsel %vm1336_vm11, %v2072_v24, %v1333_v50  ;;  %v1316_v58 = vsub.f32 1.0, %v1315_v52  ;;  %v1243_v60 = vpop.f32.mrf.mxu2 }
 0x401   :  { %v1256_v61 = vpop.f32.mrf.mxu3  ;;  %v1342_v62 = vsel %vm2781_vm8, %v1341_v39, %v1337_v56  ;;  %v1352_v63 = vsel %vm1351_vm12, %v2074_v27, %v1348_v53  ;;  %v1302_v0 = vmul.f32 %v2076_v42, %v1301_v54  ;;  %2085 = vrcp.f32 %v1298_v6 }
 0x402   :  { %1406 = vst [vmem:[#allocation2 + $0x10] sm:$0xff] %v1342_v62  ;;  %v1357_v2 = vsel %vm2785_vm10, %v1356_v51, %v1352_v63  ;;  %v1317_v3 = vmul.f32 %v2078_v46, %v1316_v58  ;;  %v1398_v21 = vand.u32 2147483647, %v1298_v6  ;;  %v1400_v23 = vand.u32 2147483648, %v1298_v6 }
 0x403   :  { %1407 = vst [vmem:[#allocation2 + $0x18] sm:$0xff] %v1357_v2  ;;  %v1303_v5 = vadd.f32 %v2076_v42, %v1302_v0  ;;  %v2082_v7 = vpop.eup %2081  ;;  %vm1394_vm7 = vweird.f32 %v1298_v6 }
 0x404   :  { %v1318_v9 = vadd.f32 %v2078_v46, %v1317_v3  ;;  %v2084_v10 = vpop.eup %2083  ;;  %v1296_v15 = vadd.f32 1.0, %v2082_v7  ;;  %vm1399_vm8 = vcmp.eq.f32.partialorder %v1398_v21, 8.507059e+37  ;;  %v1401_v30 = vor.u32 1.1754944e-38, %v1400_v23 }
 0x405   :  { %v1307_v11 = vsel %vm1306_vm1, %v2076_v42, %v1303_v5  ;;  %v1297_v17 = vadd.f32 1.0, %v2084_v10 }
 0x406   :  { %v1312_v13 = vsel %vm1309_vm3, %v1311_v8, %v1307_v11  ;;  %v1322_v14 = vsel %vm1321_vm4, %v2078_v46, %v1318_v9  ;;  %2087 = vrcp.f32 %v1296_v15  ;;  %v1370_v31 = vand.u32 2147483648, %v1296_v15 }
 0x407   :  { %1404 = vst [vmem:[#allocation2] sm:$0xff] %v1312_v13  ;;  %v1327_v16 = vsel %vm1324_vm5, %v1326_v12, %v1322_v14  ;;  %2089 = vrcp.f32 %v1297_v17  ;;  %v2086_v18 = vpop.eup %2085  ;;  %v1368_v34 = vand.u32 2147483647, %v1296_v15  ;;  %v1385_v35 = vand.u32 2147483648, %v1297_v17 }
 0x408   :  { %1405 = vst [vmem:[#allocation2 + $0x8] sm:$0xff] %v1327_v16  ;;  %v1390_v19 = vmul.f32 %v2086_v18, %v1298_v6  ;;  %vm1395_vm6 = vweird.f32 %v2086_v18  ;;  %v1383_v38 = vand.u32 2147483647, %v1297_v17  ;;  %vm1364_vm12 = vweird.f32 %v1296_v15 }
 0x409   :  { %vm1396_vm9 = vmor %vm1394_vm7, %vm1395_vm6  ;;  %v1371_v41 = vor.u32 1.1754944e-38, %v1370_v31  ;;  %vm1379_vm14 = vweird.f32 %v1297_v17  ;;  %vm1369_vm15 = vcmp.eq.f32.partialorder %v1368_v34, 8.507059e+37  ;;  %v1386_v44 = vor.u32 1.1754944e-38, %v1385_v35 }
 0x40a   :  { %v1391_v22 = vsub.f32 1.0, %v1390_v19  ;;  %vm1384_vm2 = vcmp.eq.f32.partialorder %v1383_v38, 8.507059e+37 }
 0x40c   :  { %v2088_v20 = vpop.eup %2087  ;;  %v1392_v26 = vmul.f32 %v2086_v18, %v1391_v22 }
 0x40d   :  { %v2090_v24 = vpop.eup %2089  ;;  %v1360_v25 = vmul.f32 %v2088_v20, %v1296_v15  ;;  %vm1365_vm10 = vweird.f32 %v2088_v20 }
 0x40e   :  { %v1375_v27 = vmul.f32 %v2090_v24, %v1297_v17  ;;  %v1393_v29 = vadd.f32 %v2086_v18, %v1392_v26  ;;  %vm1380_vm11 = vweird.f32 %v2090_v24  ;;  %vm1366_vm13 = vmor %vm1364_vm12, %vm1365_vm10 }
 0x40f   :  { %v1361_v28 = vsub.f32 1.0, %v1360_v25  ;;  %vm1381_vm1 = vmor %vm1379_vm14, %vm1380_vm11 }
 0x410   :  { %v1376_v32 = vsub.f32 1.0, %v1375_v27  ;;  %v1397_v36 = vsel %vm1396_vm9, %v2086_v18, %v1393_v29 }
 0x411   :  { %v1362_v33 = vmul.f32 %v2088_v20, %v1361_v28  ;;  %v1402_v39 = vsel %vm1399_vm8, %v1401_v30, %v1397_v36 }
 0x412   :  { %v1377_v37 = vmul.f32 %v2090_v24, %v1376_v32  ;;  %1410 = vst.msk [vmem:[#allocation2 + $0x30] sm:$0xff] %vm475_vm0, %v1402_v39 }
 0x413   :  { %v1363_v40 = vadd.f32 %v2088_v20, %v1362_v33 }
 0x414   :  { %v1378_v42 = vadd.f32 %v2090_v24, %v1377_v37 }
 0x415   :  { %v1367_v43 = vsel %vm1366_vm13, %v2088_v20, %v1363_v40 }
 0x416   :  { %v1372_v45 = vsel %vm1369_vm15, %v1371_v41, %v1367_v43  ;;  %v1382_v46 = vsel %vm1381_vm1, %v2090_v24, %v1378_v42 }
 0x417   :  { %1408 = vst [vmem:[#allocation2 + $0x20] sm:$0xff] %v1372_v45  ;;  %v1387_v47 = vsel %vm1384_vm2, %v1386_v44, %v1382_v46 }
 0x418   :  { %1409 = vst [vmem:[#allocation2 + $0x28] sm:$0xff] %v1387_v47 }
 0x419   :  { %1423 = dma.vmem_to_hbm [thread:$0]  %s1419_s12, 896, %s1421_s8, [#allocation3]  }
 0x41a   :  { %2115 = dma.done.wait [#allocation3], 896  }
 0x41b   :  { %2116 = vsyncadd [#allocation3], 4294966400 }
 0x41c   :  { %1432 = vsyncpa [#allocation3], 1 }

</bundles_post_ra>
